<compile_context>
chip_gen: v7x
topology: tpu7x:2x2x1
jax: 0.10.0
libtpu: 0.0.40
codegen_flags: <defaults>
</compile_context>

<pallas_src>
import functools

import jax
import jax.numpy as jnp
from jax.experimental import pallas as pl
from jax.experimental.pallas import tpu as pltpu

LANES = 128


def _srelu_kernel(x_ref, o_ref, *, tl, ar, scale):
    # Piecewise-linear S-shape as a clamp:
    #   x <= tl           -> 0
    #   tl <  x < tr      -> ar*(x - tl)/(tr - tl)
    #   x >= tr           -> ar      (since (tr - tl)*scale == ar up to 1 ulp)
    x = x_ref[...].astype(jnp.float32)
    o_ref[...] = jnp.minimum(jnp.maximum((x - tl) * scale, 0.0), ar)


def _tpu_generation():
    """Best-effort TPU generation (5/6/7/...) from the device kind string."""
    try:
        kind = jax.devices()[0].device_kind.lower()
    except Exception:
        return None
    for g in (7, 6, 5, 4):
        if str(g) in kind:
            return g
    return None


def _plan():
    """(max_block_rows, vmem_limit_bytes, dimension_semantics) for this chip."""
    gen = _tpu_generation()
    if gen is not None and gen >= 7:
        # v7x: 64 MiB VMEM per TC -> 4 MiB blocks (16 MiB pipelined buffers);
        # split the grid loop across the 2 TensorCores.
        sem = (getattr(pltpu, "CORE_PARALLEL", "parallel"),)
        return 8192, 32 * 1024 * 1024, sem
    if gen is not None and gen <= 6:
        # v4/v5e/v6e: 128 MiB VMEM, single TC -> 8 MiB blocks are free.
        return 16384, 48 * 1024 * 1024, ("parallel",)
    # Unknown chip: conservative settings that fit every generation.
    return 8192, 32 * 1024 * 1024, ("parallel",)


def srelu_limited(x, tr=2.0, tl=-2.0, ar=2.0):
    """SReLU_limited forward. Any shape; returns float32 of the same shape."""
    tr = float(tr)
    tl = float(tl)
    ar = float(ar)
    scale = ar / (tr - tl)
    kernel = functools.partial(_srelu_kernel, tl=tl, ar=ar, scale=scale)

    orig_shape = x.shape
    xf = x.reshape(-1)
    n = xf.shape[0]

    # 128-aligned prefix runs through the Pallas kernel; the (< 128 element)
    # remainder is computed directly -> no full-tensor pad/depad HBM passes.
    rows = n // LANES
    n_main = rows * LANES

    max_block_rows, vmem_limit, semantics = _plan()

    pieces = []
    if rows > 0:
        x2d = xf[:n_main].reshape(rows, LANES)
        block_rows = rows if rows <= max_block_rows else max_block_rows
        grid = (pl.cdiv(rows, block_rows),)

        def _call(dim_sem):
            return pl.pallas_call(
                kernel,
                out_shape=jax.ShapeDtypeStruct((rows, LANES), jnp.float32),
                grid=grid,
                in_specs=[pl.BlockSpec((block_rows, LANES), lambda i: (i, 0))],
                out_specs=pl.BlockSpec((block_rows, LANES), lambda i: (i, 0)),
                compiler_params=pltpu.CompilerParams(
                    dimension_semantics=dim_sem,
                    vmem_limit_bytes=vmem_limit,
                ),
            )(x2d)

        try:
            out2d = _call(semantics)
        except Exception:
            if semantics != ("arbitrary",):
                out2d = _call(("arbitrary",))  # safe fallback semantics
            else:
                raise
        pieces.append(out2d.reshape(-1))

    if n_main < n:
        # Tiny ragged tail (< 128 elements): plain jnp, negligible cost.
        tail = xf[n_main:].astype(jnp.float32)
        pieces.append(jnp.minimum(jnp.maximum((tail - tl) * scale, 0.0), ar))

    out_flat = pieces[0] if len(pieces) == 1 else jnp.concatenate(pieces)
    return out_flat.reshape(orig_shape)


def _srelu_ref(x, tr=2.0, tl=-2.0, ar=2.0):
    x = x.astype(jnp.float32)
    return ((x >= tr).astype(jnp.float32) * ar
            + (x < tr).astype(jnp.float32) * (x > tl).astype(jnp.float32)
              * ar * (x - tl) / (tr - tl)
            + (x <= tl).astype(jnp.float32) * 0.0)


if __name__ == "__main__":
    key = jax.random.PRNGKey(0)

    # NCHW-like small input (128-aligned flat size), spanning all 3 regimes.
    x = jax.random.normal(key, (2, 4, 16, 16), dtype=jnp.float32) * 3.0
    out = jax.block_until_ready(srelu_limited(x))
    ref = _srelu_ref(x)
    assert out.shape == x.shape and out.dtype == jnp.float32
    assert jnp.allclose(out, ref, atol=1e-6, rtol=1e-6), "mismatch (aligned)"

    # Unaligned flat size (exercises the no-pad main-prefix + tail path).
    key2 = jax.random.PRNGKey(1)
    x2 = jax.random.normal(key2, (2, 4, 17, 17), dtype=jnp.float32) * 3.0
    out2 = jax.block_until_ready(srelu_limited(x2))
    ref2 = _srelu_ref(x2)
    assert out2.shape == x2.shape and out2.dtype == jnp.float32
    assert jnp.allclose(out2, ref2, atol=1e-6, rtol=1e-6), "mismatch (ragged)"

    print("KERNEL_OK")
</pallas_src>

<mosaic_0001>
module attributes {stable_mosaic.version = 11 : i64} {
  func.func @_srelu_kernel(%arg0: i32, %arg1: memref<16x128xf32, #tpu.memory_space<vmem>>, %arg2: memref<16x128xf32, #tpu.memory_space<vmem>>) attributes {dimension_semantics = [#tpu.dimension_semantics<parallel>], iteration_bounds = array<i64: 1>, scalar_prefetch = 0 : i64, scratch_operands = 0 : i64, tpu.core_type = #tpu.core_type<tc>, window_params = [{transform_indices = @transform_0, window_bounds = array<i64: 16, 128>}, {transform_indices = @transform_1, window_bounds = array<i64: 16, 128>}]} {
    %c0 = arith.constant 0 : index
    %c0_0 = arith.constant 0 : index
    %0 = vector.load %arg1[%c0, %c0_0] : memref<16x128xf32, #tpu.memory_space<vmem>>, vector<16x128xf32>
    %cst = arith.constant -2.000000e+00 : f32
    %1 = vector.broadcast %cst : f32 to vector<16x128xf32>
    %2 = arith.subf %0, %1 : vector<16x128xf32>
    %cst_1 = arith.constant 5.000000e-01 : f32
    %3 = vector.broadcast %cst_1 : f32 to vector<16x128xf32>
    %4 = arith.mulf %2, %3 : vector<16x128xf32>
    %cst_2 = arith.constant 0.000000e+00 : f32
    %5 = vector.broadcast %cst_2 : f32 to vector<16x128xf32>
    %6 = arith.maximumf %4, %5 : vector<16x128xf32>
    %cst_3 = arith.constant 2.000000e+00 : f32
    %7 = vector.broadcast %cst_3 : f32 to vector<16x128xf32>
    %8 = arith.minimumf %6, %7 : vector<16x128xf32>
    %c0_4 = arith.constant 0 : index
    %c0_5 = arith.constant 0 : index
    %9 = vector.load %arg2[%c0_4, %c0_5] : memref<16x128xf32, #tpu.memory_space<vmem>>, vector<16x128xf32>
    tpu.vector_store %arg2[%c0_4, %c0_5], %8 {strides = array<i32>} : memref<16x128xf32, #tpu.memory_space<vmem>>, vector<16x128xf32>,
    return
  }
  func.func @transform_0(%arg0: i32) -> (i32, i32) {
    %c0_i32 = arith.constant 0 : i32
    %c0_i32_0 = arith.constant 0 : i32
    return %arg0, %c0_i32 : i32, i32
  }
  func.func @transform_1(%arg0: i32) -> (i32, i32) {
    %c0_i32 = arith.constant 0 : i32
    %c0_i32_0 = arith.constant 0 : i32
    return %arg0, %c0_i32 : i32, i32
  }
}

module attributes {stable_mosaic.version = 11 : i64} {
  func.func @_srelu_kernel(%arg0: i32, %arg1: memref<16x128xf32, #tpu.memory_space<vmem>>, %arg2: memref<16x128xf32, #tpu.memory_space<vmem>>) attributes {dimension_semantics = [#tpu.dimension_semantics<arbitrary>], iteration_bounds = array<i64: 1>, scalar_prefetch = 0 : i64, scratch_operands = 0 : i64, tpu.core_type = #tpu.core_type<tc>, window_params = [{transform_indices = @transform_0, window_bounds = array<i64: 16, 128>}, {transform_indices = @transform_1, window_bounds = array<i64: 16, 128>}]} {
    %c0 = arith.constant 0 : index
    %c0_0 = arith.constant 0 : index
    %0 = vector.load %arg1[%c0, %c0_0] : memref<16x128xf32, #tpu.memory_space<vmem>>, vector<16x128xf32>
    %cst = arith.constant -2.000000e+00 : f32
    %1 = vector.broadcast %cst : f32 to vector<16x128xf32>
    %2 = arith.subf %0, %1 : vector<16x128xf32>
    %cst_1 = arith.constant 5.000000e-01 : f32
    %3 = vector.broadcast %cst_1 : f32 to vector<16x128xf32>
    %4 = arith.mulf %2, %3 : vector<16x128xf32>
    %cst_2 = arith.constant 0.000000e+00 : f32
    %5 = vector.broadcast %cst_2 : f32 to vector<16x128xf32>
    %6 = arith.maximumf %4, %5 : vector<16x128xf32>
    %cst_3 = arith.constant 2.000000e+00 : f32
    %7 = vector.broadcast %cst_3 : f32 to vector<16x128xf32>
    %8 = arith.minimumf %6, %7 : vector<16x128xf32>
    %c0_4 = arith.constant 0 : index
    %c0_5 = arith.constant 0 : index
    %9 = vector.load %arg2[%c0_4, %c0_5] : memref<16x128xf32, #tpu.memory_space<vmem>>, vector<16x128xf32>
    tpu.vector_store %arg2[%c0_4, %c0_5], %8 {strides = array<i32>} : memref<16x128xf32, #tpu.memory_space<vmem>>, vector<16x128xf32>,
    return
  }
  func.func @transform_0(%arg0: i32) -> (i32, i32) {
    %c0_i32 = arith.constant 0 : i32
    %c0_i32_0 = arith.constant 0 : i32
    return %arg0, %c0_i32 : i32, i32
  }
  func.func @transform_1(%arg0: i32) -> (i32, i32) {
    %c0_i32 = arith.constant 0 : i32
    %c0_i32_0 = arith.constant 0 : i32
    return %arg0, %c0_i32 : i32, i32
  }
}

</mosaic_0001>

<bundles_post_ra>
// kernel: tpu_custom_call.1
= control target key start
LH: loop header
LB: loop body
LE: loop exit
PB: predicated region body
PF: predicated region fallthrough
CT: control target
= control target key end

     0   :  { %6 = vsyncpa [#allocation3], 0  ;;  %s150_s0 = inlined_call_operand.hbm [shape: f32[16,128], index: 0, kind: input, shape index: {}]   ;;  %s151_s1 = inlined_call_operand.hbm [shape: f32[16,128], index: 1, kind: output, shape index: {}]  }
   0x1   :  { %7 = vsyncpa [#allocation4], 0  ;;  %s106_s6 = smov [#allocation2]   ;;  %s58_s10 = scalar_lea.hbm %s150_s0, 256 }
   0x2   :  { %s13_s7 = sshll.u32 %s106_s6, 4  ;;  %p59_p0 = scmp.ne.s32.totalorder %s150_s0, %s58_s10  ;;  %s14_s7 = int_to_ptr.vmem [resolvable:$true] %s13_s7 }
   0x3   :  { %p62_p1 = scmp.lt.u32.totalorder %s58_s10, %s150_s0 }
   0x5   :  { %p64_p2 = pnand %p62_p1, %p59_p0 }
   0x7   :  { %67 = shalt.err (!%p64_p2)
}
   0x8   :  { %s68_s15 = scalar_lea.vmem %s14_s7, 256  ;;  %p73_p4 = scmp.lt.s32.totalorder %s14_s7, %s14_s7 }
   0x9   :  { %p69_p3 = scmp.ne.s32.totalorder %s14_s7, %s68_s15  ;;  %p74_p5 = scmp.lt.s32.totalorder %s68_s15, %s68_s15 }
   0xb   :  { %p75_p6 = por %p74_p5, %p73_p4 }
   0xd   :  { %p76_p7 = pnand %p75_p6, %p69_p3 }
   0xf   :  { %79 = shalt.err (!%p76_p7)
}
  0x10   :  { %s107_s16 = smov 128   ;;  %s108_s17 = smov 8  }
  0x11   :  { %19 = dma.hbm_to_vmem [thread:$0]  %s150_s0, 256, %s14_s7, [#allocation3], %s107_s16, %s107_s16, %s108_s17  }
  0x12   :  { %102 = dma.done.wait [#allocation3], 256  }
  0x13   :  { %103 = vsyncadd [#allocation3], 4294967040  ;;  %v23_v0 = vld [vmem:[#allocation2] sm:$0xff]  ;;  %v24_v1 = vld [vmem:[#allocation2 + $0x8] sm:$0xff]  ;;  %s109_s20 = smov [#allocation5]  }
  0x14   :  { %v52_v2 = vadd.f32 2.0, %v23_v0  ;;  %v53_v3 = vadd.f32 2.0, %v24_v1  ;;  %s40_s21 = sshll.u32 %s109_s20, 4  ;;  %s41_s21 = int_to_ptr.vmem [resolvable:$true] %s40_s21 }
  0x15   :  { %s80_s22 = scalar_lea.vmem %s41_s21, 256  ;;  %p85_p9 = scmp.lt.s32.totalorder %s41_s21, %s41_s21 }
  0x16   :  { %v27_v4 = vmul.f32 0.5, %v52_v2  ;;  %v28_v5 = vmul.f32 0.5, %v53_v3  ;;  %p81_p8 = scmp.ne.s32.totalorder %s41_s21, %s80_s22  ;;  %p86_p10 = scmp.lt.s32.totalorder %s80_s22, %s80_s22 }
  0x18   :  { %v29_v6 = vmax.f32 %v27_v4, 0.0  ;;  %v30_v7 = vmax.f32 %v28_v5, 0.0  ;;  %p87_p11 = por %p86_p10, %p85_p9 }
  0x1a   :  { %v31_v8 = vmin.f32 %v29_v6, 2.0  ;;  %v32_v9 = vmin.f32 %v30_v7, 2.0  ;;  %p88_p12 = pnand %p87_p11, %p81_p8 }
  0x1c   :  { %33 = vst [vmem:[#allocation5] sm:$0xff] %v31_v8  ;;  %34 = vst [vmem:[#allocation5 + $0x8] sm:$0xff] %v32_v9 }
  0x1d   :  { %91 = shalt.err (!%p88_p12)
}
  0x1e   :  { %s92_s24 = scalar_lea.hbm %s151_s1, 256 }
  0x1f   :  { %p93_p13 = scmp.ne.s32.totalorder %s151_s1, %s92_s24  ;;  %p96_p0 = scmp.lt.u32.totalorder %s92_s24, %s151_s1 }
  0x21   :  { %p98_p1 = pnand %p96_p0, %p93_p13 }
  0x23   :  { %101 = shalt.err (!%p98_p1)
}
  0x24   :  { %46 = dma.vmem_to_hbm [thread:$0]  %s41_s21, 256, %s151_s1, [#allocation4], %s107_s16, %s107_s16, %s108_s17  }
  0x25   :  { %104 = dma.done.wait [#allocation4], 256  }
  0x26   :  { %105 = vsyncadd [#allocation4], 4294967040 }
  0x27   :  { %50 = vsyncpa [#allocation3], 1 }
  0x28   :  { %51 = vsyncpa [#allocation4], 1 }

// kernel: tpu_custom_call.1
= control target key start
LH: loop header
LB: loop body
LE: loop exit
PB: predicated region body
PF: predicated region fallthrough
CT: control target
= control target key end

     0   :  { %6 = vsyncpa [#allocation3], 0  ;;  %s150_s0 = inlined_call_operand.hbm [shape: f32[16,128], index: 0, kind: input, shape index: {}]   ;;  %s151_s1 = inlined_call_operand.hbm [shape: f32[16,128], index: 1, kind: output, shape index: {}]  }
   0x1   :  { %7 = vsyncpa [#allocation4], 0  ;;  %s106_s6 = smov [#allocation2]   ;;  %s58_s10 = scalar_lea.hbm %s150_s0, 256 }
   0x2   :  { %s13_s7 = sshll.u32 %s106_s6, 4  ;;  %p59_p0 = scmp.ne.s32.totalorder %s150_s0, %s58_s10  ;;  %s14_s7 = int_to_ptr.vmem [resolvable:$true] %s13_s7 }
   0x3   :  { %p62_p1 = scmp.lt.u32.totalorder %s58_s10, %s150_s0 }
   0x5   :  { %p64_p2 = pnand %p62_p1, %p59_p0 }
   0x7   :  { %67 = shalt.err (!%p64_p2)
}
   0x8   :  { %s68_s15 = scalar_lea.vmem %s14_s7, 256  ;;  %p73_p4 = scmp.lt.s32.totalorder %s14_s7, %s14_s7 }
   0x9   :  { %p69_p3 = scmp.ne.s32.totalorder %s14_s7, %s68_s15  ;;  %p74_p5 = scmp.lt.s32.totalorder %s68_s15, %s68_s15 }
   0xb   :  { %p75_p6 = por %p74_p5, %p73_p4 }
   0xd   :  { %p76_p7 = pnand %p75_p6, %p69_p3 }
   0xf   :  { %79 = shalt.err (!%p76_p7)
}
  0x10   :  { %s107_s16 = smov 128   ;;  %s108_s17 = smov 8  }
  0x11   :  { %19 = dma.hbm_to_vmem [thread:$0]  %s150_s0, 256, %s14_s7, [#allocation3], %s107_s16, %s107_s16, %s108_s17  }
  0x12   :  { %102 = dma.done.wait [#allocation3], 256  }
  0x13   :  { %103 = vsyncadd [#allocation3], 4294967040  ;;  %v23_v0 = vld [vmem:[#allocation2] sm:$0xff]  ;;  %v24_v1 = vld [vmem:[#allocation2 + $0x8] sm:$0xff]  ;;  %s109_s20 = smov [#allocation5]  }
  0x14   :  { %v52_v2 = vadd.f32 2.0, %v23_v0  ;;  %v53_v3 = vadd.f32 2.0, %v24_v1  ;;  %s40_s21 = sshll.u32 %s109_s20, 4  ;;  %s41_s21 = int_to_ptr.vmem [resolvable:$true] %s40_s21 }
  0x15   :  { %s80_s22 = scalar_lea.vmem %s41_s21, 256  ;;  %p85_p9 = scmp.lt.s32.totalorder %s41_s21, %s41_s21 }
  0x16   :  { %v27_v4 = vmul.f32 0.5, %v52_v2  ;;  %v28_v5 = vmul.f32 0.5, %v53_v3  ;;  %p81_p8 = scmp.ne.s32.totalorder %s41_s21, %s80_s22  ;;  %p86_p10 = scmp.lt.s32.totalorder %s80_s22, %s80_s22 }
  0x18   :  { %v29_v6 = vmax.f32 %v27_v4, 0.0  ;;  %v30_v7 = vmax.f32 %v28_v5, 0.0  ;;  %p87_p11 = por %p86_p10, %p85_p9 }
  0x1a   :  { %v31_v8 = vmin.f32 %v29_v6, 2.0  ;;  %v32_v9 = vmin.f32 %v30_v7, 2.0  ;;  %p88_p12 = pnand %p87_p11, %p81_p8 }
  0x1c   :  { %33 = vst [vmem:[#allocation5] sm:$0xff] %v31_v8  ;;  %34 = vst [vmem:[#allocation5 + $0x8] sm:$0xff] %v32_v9 }
  0x1d   :  { %91 = shalt.err (!%p88_p12)
}
  0x1e   :  { %s92_s24 = scalar_lea.hbm %s151_s1, 256 }
  0x1f   :  { %p93_p13 = scmp.ne.s32.totalorder %s151_s1, %s92_s24  ;;  %p96_p0 = scmp.lt.u32.totalorder %s92_s24, %s151_s1 }
  0x21   :  { %p98_p1 = pnand %p96_p0, %p93_p13 }
  0x23   :  { %101 = shalt.err (!%p98_p1)
}
  0x24   :  { %46 = dma.vmem_to_hbm [thread:$0]  %s41_s21, 256, %s151_s1, [#allocation4], %s107_s16, %s107_s16, %s108_s17  }
  0x25   :  { %104 = dma.done.wait [#allocation4], 256  }
  0x26   :  { %105 = vsyncadd [#allocation4], 4294967040 }
  0x27   :  { %50 = vsyncpa [#allocation3], 1 }
  0x28   :  { %51 = vsyncpa [#allocation4], 1 }

</bundles_post_ra>
